<compile_context>
chip_gen: v5e
topology: v5e:2x2
jax: 0.10.0
libtpu: 0.0.40
codegen_flags: <defaults>
</compile_context>

<pallas_src>
import functools

import jax
import jax.numpy as jnp
from jax.experimental import pallas as pl
from jax.experimental.pallas import tpu as pltpu


# ----------------------------------------------------------------------------- helpers

def _round_up(n, m):
    return ((n + m - 1) // m) * m


def _pick_tile(padded_dim, target, step=256):
    """Largest multiple of `step` <= target that divides padded_dim (a multiple of step)."""
    t = max(step, (min(target, padded_dim) // step) * step)
    while padded_dim % t:
        t -= step
    return t


_VMEM_CAP = None


def _vmem_cap():
    """3/4 of the physical per-core VMEM (conservative default: v7x's 64 MiB)."""
    global _VMEM_CAP
    if _VMEM_CAP is None:
        try:
            phys = pltpu.get_tpu_info().vmem_capacity_bytes
        except Exception:
            phys = 64 << 20
        _VMEM_CAP = (phys * 3) // 4
    return _VMEM_CAP


def _vmem_limit(need_bytes):
    """Footprint + headroom for compiler-internal scratch, capped below physical VMEM."""
    limit = int(need_bytes) + (16 << 20)
    return int(min(max(limit, 32 << 20), _vmem_cap()))


def _a_tile_spec(tm, tk):
    """(tm, tk) A_hat tile: 3-deep pipelined on the dominant HBM stream if supported."""
    try:
        return pl.BlockSpec((tm, tk), lambda i, k: (i, k),
                            pipeline_mode=pl.Buffered(3))
    except TypeError:  # older Pallas without pipeline_mode: default double-buffering
        return pl.BlockSpec((tm, tk), lambda i, k: (i, k))


def _z_spec(NP, C, tk, dtype):
    """BlockSpec for the propagated operand Z: VMEM-resident when it fits, else streamed."""
    itemsize = jnp.dtype(dtype).itemsize
    resident_bytes = 2 * NP * C * itemsize  # assume double-buffered for the budget
    if resident_bytes <= _vmem_cap() // 3:
        return pl.BlockSpec((NP, C), lambda i, k: (0, 0)), resident_bytes
    return pl.BlockSpec((tk, C), lambda i, k: (k, 0)), 2 * tk * C * itemsize


# ----------------------------------------------------------------------------- kernels

def linear_bias_kernel(x_ref, w_ref, b_ref, o_ref):
    """o = x @ w + b   (bf16 MXU operands, f32 accumulation + bias, bf16 store)."""
    z = jnp.dot(x_ref[...], w_ref[...], preferred_element_type=jnp.float32)
    o_ref[...] = (z + b_ref[...]).astype(o_ref.dtype)


def _z_tile(z_ref, k, tk):
    """k-th (tk, C) row-slab of Z; Z is either VMEM-resident (full block) or streamed."""
    if z_ref.shape[0] == tk:          # streamed per k-tile (or single k-tile)
        return z_ref[...]
    return z_ref[pl.ds(pl.multiple_of(k * tk, tk), tk), :]   # resident: slice in VMEM


def propagate_relu_linear_kernel(a_ref, z_ref, w_ref, b_ref, o_ref, acc_ref, *, tk):
    """acc[i] += A[i,k] @ Z[k];  at last k:  o[i] = relu(acc[i]) @ W2 + b2  (bf16)."""
    k = pl.program_id(1)

    @pl.when(k == 0)
    def _init():
        acc_ref[...] = jnp.zeros_like(acc_ref)

    acc_ref[...] += jnp.dot(a_ref[...], _z_tile(z_ref, k, tk),
                            preferred_element_type=jnp.float32)

    @pl.when(k == pl.num_programs(1) - 1)
    def _finalize():
        h = jnp.maximum(acc_ref[...], 0.0).astype(w_ref.dtype)
        z2 = jnp.dot(h, w_ref[...], preferred_element_type=jnp.float32) + b_ref[...]
        o_ref[...] = z2.astype(o_ref.dtype)


def propagate_kernel(a_ref, z_ref, o_ref, *, tk):
    """o[i] = sum_k A[i,k] @ Z[k]; accumulates directly into the resident f32 out block."""
    k = pl.program_id(1)
    part = jnp.dot(a_ref[...], _z_tile(z_ref, k, tk),
                   preferred_element_type=jnp.float32)

    @pl.when(k == 0)
    def _init():
        o_ref[...] = part

    @pl.when(k != 0)
    def _accum():
        o_ref[...] += part


# ----------------------------------------------------------------------------- wrappers

def _linear(x, w, b, *, tm):
    """Z = X @ W + b, bf16 lane-dense output, row-tiled grid."""
    NP, Fp = x.shape
    Hp = w.shape[1]
    need = (2 * tm * Fp * 2 + 2 * Fp * Hp * 2 + 2 * 8 * Hp * 4 + 2 * tm * Hp * 2)
    return pl.pallas_call(
        linear_bias_kernel,
        out_shape=jax.ShapeDtypeStruct((NP, Hp), jnp.bfloat16),
        grid_spec=pltpu.PrefetchScalarGridSpec(
            num_scalar_prefetch=0,
            grid=(NP // tm,),
            in_specs=[
                pl.BlockSpec((tm, Fp), lambda i: (i, 0)),
                pl.BlockSpec((Fp, Hp), lambda i: (0, 0)),   # W resident
                pl.BlockSpec((1, Hp), lambda i: (0, 0)),    # bias resident
            ],
            out_specs=pl.BlockSpec((tm, Hp), lambda i: (i, 0)),
        ),
        compiler_params=pltpu.CompilerParams(
            dimension_semantics=("parallel",),
            vmem_limit_bytes=_vmem_limit(need),
        ),
    )(x, w, b)


def _propagate_relu_linear(a, z, w, b, *, tm, tk):
    """Z2 = relu(A @ Z) @ W2 + b2, A streamed in (tm, tk) tiles, Z/W2/b2 resident."""
    NP = a.shape[0]
    Hp = z.shape[1]
    Op = w.shape[1]
    z_spec, z_bytes = _z_spec(NP, Hp, tk, z.dtype)
    need = (3 * tm * tk * 2 + z_bytes + 2 * Hp * Op * 2 + 2 * 8 * Op * 4
            + 2 * tm * Op * 2 + tm * Hp * 4)
    kernel = functools.partial(propagate_relu_linear_kernel, tk=tk)
    return pl.pallas_call(
        kernel,
        out_shape=jax.ShapeDtypeStruct((NP, Op), jnp.bfloat16),
        grid_spec=pltpu.PrefetchScalarGridSpec(
            num_scalar_prefetch=0,
            grid=(NP // tm, NP // tk),
            in_specs=[
                _a_tile_spec(tm, tk),                        # A_hat tile stream
                z_spec,                                      # Z1 (resident if it fits)
                pl.BlockSpec((Hp, Op), lambda i, k: (0, 0)),  # W2 resident
                pl.BlockSpec((1, Op), lambda i, k: (0, 0)),   # b2 resident
            ],
            out_specs=pl.BlockSpec((tm, Op), lambda i, k: (i, 0)),
            scratch_shapes=[pltpu.VMEM((tm, Hp), jnp.float32)],
        ),
        compiler_params=pltpu.CompilerParams(
            dimension_semantics=("parallel", "arbitrary"),
            vmem_limit_bytes=_vmem_limit(need),
        ),
    )(a, z, w, b)


def _propagate(a, z, *, tm, tk):
    """out = A @ Z (f32), accumulating straight into the resident output block."""
    NP = a.shape[0]
    C = z.shape[1]
    z_spec, z_bytes = _z_spec(NP, C, tk, z.dtype)
    need = 3 * tm * tk * 2 + z_bytes + 2 * tm * C * 4
    kernel = functools.partial(propagate_kernel, tk=tk)
    return pl.pallas_call(
        kernel,
        out_shape=jax.ShapeDtypeStruct((NP, C), jnp.float32),
        grid_spec=pltpu.PrefetchScalarGridSpec(
            num_scalar_prefetch=0,
            grid=(NP // tm, NP // tk),
            in_specs=[_a_tile_spec(tm, tk), z_spec],
            out_specs=pl.BlockSpec((tm, C), lambda i, k: (i, 0)),
        ),
        compiler_params=pltpu.CompilerParams(
            dimension_semantics=("parallel", "arbitrary"),
            vmem_limit_bytes=_vmem_limit(need),
        ),
    )(a, z)


def two_layer_gcn(x, adjacency_hat, w1, b1, w2, b2, *, block_m=512, block_k=512):
    """x: (N, F) f32, adjacency_hat: (N, N) f32 (densified sparse matrix).

    w1: (F, H) = torch W1.weight.T   b1: (1, H)
    w2: (H, O) = torch W2.weight.T   b2: (1, O)
    returns (N, O) f32 logits.
    """
    N, F = x.shape
    H = w1.shape[1]
    O = w2.shape[1]

    # Lane/sublane-dense padded sizes; N padded to 256 so tiles fill the 256-wide
    # MXUs on v6e/v7x. Padding is zero and therefore exact: padded Z rows equal the
    # bias, but the zero columns of padded A_hat null them (keep this invariant).
    NP = _round_up(N, 256)
    Fp = _round_up(F, 128)
    Hp = _round_up(H, 128)
    Op = _round_up(O, 128)

    xp = jnp.pad(x.astype(jnp.bfloat16), ((0, NP - N), (0, Fp - F)))
    ap = jnp.pad(adjacency_hat.astype(jnp.bfloat16), ((0, NP - N), (0, NP - N)))
    w1p = jnp.pad(w1.astype(jnp.bfloat16), ((0, Fp - F), (0, Hp - H)))
    b1p = jnp.pad(b1.astype(jnp.float32), ((0, 0), (0, Hp - H)))
    w2p = jnp.pad(w2.astype(jnp.bfloat16), ((0, Hp - H), (0, Op - O)))
    b2p = jnp.pad(b2.astype(jnp.float32), ((0, 0), (0, Op - O)))

    tm = _pick_tile(NP, block_m)
    tk = _pick_tile(NP, block_k)

    # 1) Z1 = X @ W1 + b1           -- computed once, not per row-tile.
    z1 = _linear(xp, w1p, b1p, tm=tm)
    # 2) Z2 = relu(A @ Z1) @ W2 + b2 -- layer-2 linear fused into the finalize.
    z2 = _propagate_relu_linear(ap, z1, w2p, b2p, tm=tm, tk=tk)
    # 3) out = A @ Z2
    out = _propagate(ap, z2, tm=tm, tk=tk)
    return out[:N, :O]


# ----------------------------------------------------------------------------- references

def reference_f32(x, a, w1, b1, w2, b2):
    """Pure-f32 PyTorch-semantics reference."""
    h = jnp.maximum(a @ (x @ w1 + b1), 0.0)
    return a @ (h @ w2 + b2)


def reference_bf16(x, a, w1, b1, w2, b2):
    """Reference with the kernel's numerics (bf16 operands, f32 accumulation)."""
    xb, ab = x.astype(jnp.bfloat16), a.astype(jnp.bfloat16)
    w1b, w2b = w1.astype(jnp.bfloat16), w2.astype(jnp.bfloat16)
    z1 = jnp.dot(xb, w1b, preferred_element_type=jnp.float32) + b1
    h = jnp.maximum(jnp.dot(ab, z1.astype(jnp.bfloat16),
                            preferred_element_type=jnp.float32), 0.0)
    z2 = jnp.dot(h.astype(jnp.bfloat16), w2b,
                 preferred_element_type=jnp.float32) + b2
    return jnp.dot(ab, z2.astype(jnp.bfloat16), preferred_element_type=jnp.float32)


if __name__ == "__main__":
    # Small deterministic problem: N nodes, input F, hidden H, classes O.
    # N is deliberately not a multiple of 256 and O < 128 to exercise padding;
    # with defaults this gives NP=256, tm=tk=256 -> a single-step propagation grid.
    N, F, H, O = 200, 48, 32, 7

    key = jax.random.PRNGKey(0)
    kx, ka, kw1, kb1, kw2, kb2 = jax.random.split(key, 6)

    # Node features.
    x = jax.random.normal(kx, (N, F), dtype=jnp.float32)

    # Symmetric-normalized adjacency A_hat = D^-1/2 (A + I) D^-1/2
    # (densified stand-in for the torch.sparse_coo_tensor input).
    a_rand = jax.random.uniform(ka, (N, N)) < 0.05
    a = (jnp.logical_or(a_rand, a_rand.T).astype(jnp.float32)
         + jnp.eye(N, dtype=jnp.float32))
    deg = jnp.sum(a, axis=1)
    d_inv_sqrt = 1.0 / jnp.sqrt(deg)
    a_hat = a * d_inv_sqrt[:, None] * d_inv_sqrt[None, :]

    # nn.Linear parameters (W1: (H, F), b1: (H,); W2: (O, H), b2: (O,)),
    # stored pre-transposed for row-major matmuls.
    w1 = (jax.random.normal(kw1, (H, F), dtype=jnp.float32) / jnp.sqrt(F)).T   # (F, H)
    b1 = jax.random.normal(kb1, (1, H), dtype=jnp.float32) * 0.01
    w2 = (jax.random.normal(kw2, (O, H), dtype=jnp.float32) / jnp.sqrt(H)).T   # (H, O)
    b2 = jax.random.normal(kb2, (1, O), dtype=jnp.float32) * 0.01

    out = two_layer_gcn(x, a_hat, w1, b1, w2, b2)
    out = jax.block_until_ready(out)
    assert out.shape == (N, O)

    # Tight check against a reference using the same bf16/f32 numerics.
    ref_b = reference_bf16(x, a_hat, w1, b1, w2, b2)
    assert jnp.allclose(out, ref_b, atol=5e-3, rtol=5e-3), "mismatch vs bf16 reference"

    # Loose check against the pure-f32 PyTorch-semantics reference.
    ref_f = reference_f32(x, a_hat, w1, b1, w2, b2)
    assert jnp.allclose(out, ref_f, atol=5e-2, rtol=5e-2), "mismatch vs f32 reference"

    print("KERNEL_OK")
</pallas_src>

<mosaic_0001>
module attributes {stable_mosaic.version = 11 : i64} {
  func.func @linear_bias_kernel(%arg0: i32, %arg1: memref<256x128xbf16, #tpu.memory_space<vmem>>, %arg2: memref<128x128xbf16, #tpu.memory_space<vmem>>, %arg3: memref<1x128xf32, #tpu.memory_space<vmem>>, %arg4: memref<256x128xbf16, #tpu.memory_space<vmem>>) attributes {dimension_semantics = [#tpu.dimension_semantics<parallel>], iteration_bounds = array<i64: 1>, scalar_prefetch = 0 : i64, scratch_operands = 0 : i64, tpu.core_type = #tpu.core_type<tc>, window_params = [{transform_indices = @transform_0, window_bounds = array<i64: 256, 128>}, {pipeline_mode = #tpu.pipeline_mode<synchronous>, transform_indices = @transform_1, window_bounds = array<i64: 128, 128>}, {pipeline_mode = #tpu.pipeline_mode<synchronous>, transform_indices = @transform_2, window_bounds = array<i64: 1, 128>}, {transform_indices = @transform_3, window_bounds = array<i64: 256, 128>}]} {
    %c0 = arith.constant 0 : index
    %c0_0 = arith.constant 0 : index
    %0 = vector.load %arg1[%c0, %c0_0] : memref<256x128xbf16, #tpu.memory_space<vmem>>, vector<256x128xbf16>
    %c0_1 = arith.constant 0 : index
    %c0_2 = arith.constant 0 : index
    %1 = vector.load %arg2[%c0_1, %c0_2] : memref<128x128xbf16, #tpu.memory_space<vmem>>, vector<128x128xbf16>
    %cst = arith.constant dense<0.000000e+00> : vector<256x128xf32>
    %2 = tpu.matmul %0, %1, %cst {dimension_numbers = #tpu.dot_dimension_numbers<[1], [0], [0], [1], [0, 0, 1, 1], [], []>} : vector<256x128xbf16>, vector<128x128xbf16>, vector<256x128xf32> -> vector<256x128xf32>
    %c0_3 = arith.constant 0 : index
    %c0_4 = arith.constant 0 : index
    %3 = vector.load %arg3[%c0_3, %c0_4] : memref<1x128xf32, #tpu.memory_space<vmem>>, vector<1x128xf32>
    %4 = vector.broadcast %3 : vector<1x128xf32> to vector<256x128xf32>
    %5 = arith.addf %2, %4 : vector<256x128xf32>
    %6 = arith.truncf %5 : vector<256x128xf32> to vector<256x128xbf16>
    %c0_5 = arith.constant 0 : index
    %c0_6 = arith.constant 0 : index
    %7 = vector.load %arg4[%c0_5, %c0_6] : memref<256x128xbf16, #tpu.memory_space<vmem>>, vector<256x128xbf16>
    tpu.vector_store %arg4[%c0_5, %c0_6], %6 {strides = array<i32>} : memref<256x128xbf16, #tpu.memory_space<vmem>>, vector<256x128xbf16>,
    return
  }
  func.func @transform_0(%arg0: i32) -> (i32, i32) {
    %c0_i32 = arith.constant 0 : i32
    %c0_i32_0 = arith.constant 0 : i32
    return %arg0, %c0_i32 : i32, i32
  }
  func.func @transform_1(%arg0: i32) -> (i32, i32) {
    %c0_i32 = arith.constant 0 : i32
    %c0_i32_0 = arith.constant 0 : i32
    %c0_i32_1 = arith.constant 0 : i32
    return %c0_i32, %c0_i32_0 : i32, i32
  }
  func.func @transform_2(%arg0: i32) -> (i32, i32) {
    %c0_i32 = arith.constant 0 : i32
    %c0_i32_0 = arith.constant 0 : i32
    %c0_i32_1 = arith.constant 0 : i32
    return %c0_i32, %c0_i32_0 : i32, i32
  }
  func.func @transform_3(%arg0: i32) -> (i32, i32) {
    %c0_i32 = arith.constant 0 : i32
    %c0_i32_0 = arith.constant 0 : i32
    return %arg0, %c0_i32 : i32, i32
  }
}

</mosaic_0001>

<bundles_post_ra>
// kernel: tpu_custom_call.1
= control target key start
LH: loop header
LB: loop body
LE: loop exit
PB: predicated region body
PF: predicated region fallthrough
CT: control target
= control target key end

     0   :  { %8 = vsyncpa [#allocation3], 0  ;;  %s819_s0 = inlined_call_operand.hbm [shape: bf16[256,128], index: 0, kind: input, shape index: {}]   ;;  %s820_s1 = inlined_call_operand.hbm [shape: bf16[128,128], index: 1, kind: input, shape index: {}]   ;;  %s821_s2 = inlined_call_operand.vmem [shape: f32[1,128], index: 2, kind: input, shape index: {}]   ;;  %s822_s3 = inlined_call_operand.hbm [shape: bf16[256,128], index: 3, kind: output, shape index: {}]  }
   0x1   :  { %9 = vsyncpa [#allocation6], 0 }
   0x2   :  { %10 = vsyncpa [#allocation4], 0  ;;  %s15_s14 = sshll.u32 %s819_s0, 4  ;;  %s739_s15 = smov [#allocation2]   ;;  %s16_s14 = int_to_ptr.hbm [resolvable:$true] %s15_s14 }
   0x3   :  { %s17_s16 = sshll.u32 %s739_s15, 4  ;;  %s28_s19 = sshll.u32 %s820_s1, 4  ;;  %s18_s16 = int_to_ptr.vmem [resolvable:$true] %s17_s16  ;;  %s29_s19 = int_to_ptr.hbm [resolvable:$true] %s28_s19 }
   0x4   :  { %s740_s20 = smov 64   ;;  %s741_s21 = smov 4  }
   0x5   :  { %23 = dma.hbm_to_vmem [thread:$0]  %s16_s14, 2048, %s18_s16, [#allocation3], %s740_s20, %s740_s20, %s741_s21  }
   0x6   :  { %s742_s22 = smov [#allocation5]  }
   0x7   :  { %s30_s23 = sshll.u32 %s742_s22, 4  ;;  %s31_s23 = int_to_ptr.vmem [resolvable:$true] %s30_s23 }
   0x8   :  { %36 = dma.hbm_to_vmem [thread:$0]  %s29_s19, 1024, %s31_s23, [#allocation6], %s740_s20, %s740_s20, %s741_s21  }
   0x9   :  { %733 = dma.done.wait [#allocation3], 2048  }
   0xa   :  { %734 = vsyncadd [#allocation3], 4294965248 }
   0xb   :  { %735 = dma.done.wait [#allocation6], 1024  }
   0xc   :  { %736 = vsyncadd [#allocation6], 4294966272  ;;  %v535_v0 = vld [vmem:[#allocation5 + $0x38] sm:$0xff]  ;;  %v534_v1 = vld [vmem:[#allocation5 + $0x30] sm:$0xff]  ;;  %s402_s27 = sshll.u32 %s822_s3, 4  ;;  %s403_s27 = int_to_ptr.hbm [resolvable:$true] %s402_s27 }
   0xd   :  { %243 = vmatpush.bf16.msra.mxu0 %v535_v0  ;;  %631 = vmatpush.bf16.msra.mxu1 %v535_v0  ;;  %v533_v2 = vld [vmem:[#allocation5 + $0x28] sm:$0xff]  ;;  %v532_v3 = vld [vmem:[#allocation5 + $0x20] sm:$0xff]  ;;  %v531_v4 = vld [vmem:[#allocation5 + $0x18] sm:$0xff] }
   0xe   :  { %632 = vmatpush.bf16.msra.mxu2 %v535_v0  ;;  %633 = vmatpush.bf16.msra.mxu3 %v535_v0  ;;  %v530_v5 = vld [vmem:[#allocation5 + $0x10] sm:$0xff]  ;;  %v529_v6 = vld [vmem:[#allocation5 + $0x8] sm:$0xff]  ;;  %v528_v7 = vld [vmem:[#allocation5] sm:$0xff] }
   0xf   :  { %v512_v8 = vld [vmem:[#allocation2] sm:$0xff]  ;;  %v513_v12 = vld [vmem:[#allocation2 + $0x8] sm:$0xff]  ;;  %v514_v16 = vld [vmem:[#allocation2 + $0x10] sm:$0xff] }
  0x10   :  { %v516_v9 = vld [vmem:[#allocation2 + $0x20] sm:$0xff]  ;;  %v517_v13 = vld [vmem:[#allocation2 + $0x28] sm:$0xff]  ;;  %v518_v17 = vld [vmem:[#allocation2 + $0x30] sm:$0xff] }
  0x11   :  { %244 = vmatpush.bf16.msra.mxu0 %v534_v1  ;;  %634 = vmatpush.bf16.msra.mxu1 %v534_v1  ;;  %v520_v10 = vld [vmem:[#allocation2 + $0x40] sm:$0xff]  ;;  %v521_v14 = vld [vmem:[#allocation2 + $0x48] sm:$0xff]  ;;  %v522_v18 = vld [vmem:[#allocation2 + $0x50] sm:$0xff] }
  0x12   :  { %635 = vmatpush.bf16.msra.mxu2 %v534_v1  ;;  %636 = vmatpush.bf16.msra.mxu3 %v534_v1  ;;  %v524_v11 = vld [vmem:[#allocation2 + $0x60] sm:$0xff]  ;;  %v525_v15 = vld [vmem:[#allocation2 + $0x68] sm:$0xff]  ;;  %v526_v19 = vld [vmem:[#allocation2 + $0x70] sm:$0xff] }
  0x13   :  { %v515_v20 = vld [vmem:[#allocation2 + $0x18] sm:$0xff]  ;;  %v779_v26 = vld [vmem:[%s821_s2] ss:$0 sm:$0xff]  ;;  %s743_s2 = smov [#allocation7]  }
  0x14   :  { %v519_v21 = vld [vmem:[#allocation2 + $0x38] sm:$0xff]  ;;  %s400_s24 = sshll.u32 %s743_s2, 4  ;;  %s401_s24 = int_to_ptr.vmem [resolvable:$true] %s400_s24 }
  0x15   :  { %245 = vmatpush.bf16.msra.mxu0 %v533_v2  ;;  %637 = vmatpush.bf16.msra.mxu1 %v533_v2  ;;  %v523_v22 = vld [vmem:[#allocation2 + $0x58] sm:$0xff] }
  0x16   :  { %638 = vmatpush.bf16.msra.mxu2 %v533_v2  ;;  %639 = vmatpush.bf16.msra.mxu3 %v533_v2  ;;  %v527_v23 = vld [vmem:[#allocation2 + $0x78] sm:$0xff] }
  0x19   :  { %246 = vmatpush.bf16.msra.mxu0 %v532_v3  ;;  %640 = vmatpush.bf16.msra.mxu1 %v532_v3 }
  0x1a   :  { %641 = vmatpush.bf16.msra.mxu2 %v532_v3  ;;  %642 = vmatpush.bf16.msra.mxu3 %v532_v3 }
  0x1d   :  { %247 = vmatpush.bf16.msra.mxu0 %v531_v4  ;;  %643 = vmatpush.bf16.msra.mxu1 %v531_v4 }
  0x1e   :  { %644 = vmatpush.bf16.msra.mxu2 %v531_v4  ;;  %645 = vmatpush.bf16.msra.mxu3 %v531_v4 }
  0x21   :  { %248 = vmatpush.bf16.msra.mxu0 %v530_v5  ;;  %646 = vmatpush.bf16.msra.mxu1 %v530_v5 }
  0x22   :  { %647 = vmatpush.bf16.msra.mxu2 %v530_v5  ;;  %648 = vmatpush.bf16.msra.mxu3 %v530_v5 }
  0x25   :  { %249 = vmatpush.bf16.msra.mxu0 %v529_v6  ;;  %649 = vmatpush.bf16.msra.mxu1 %v529_v6 }
  0x26   :  { %650 = vmatpush.bf16.msra.mxu2 %v529_v6  ;;  %651 = vmatpush.bf16.msra.mxu3 %v529_v6 }
  0x29   :  { %250 = vmatpush.bf16.msra.mxu0 %v528_v7  ;;  %652 = vmatpush.bf16.msra.mxu1 %v528_v7 }
  0x2a   :  { %653 = vmatpush.bf16.msra.mxu2 %v528_v7  ;;  %654 = vmatpush.bf16.msra.mxu3 %v528_v7 }
  0x2c   :  { %251 = vmatmul.bf16.vlgmr.msra.gmra.mxu0 %v512_v8  ;;  %271 = vmatmul.bf16.vlgmr.msra.gmra.mxu1 %v516_v9 }
  0x2d   :  { %291 = vmatmul.bf16.vlgmr.msra.gmra.mxu2 %v520_v10  ;;  %311 = vmatmul.bf16.vlgmr.msra.gmra.mxu3 %v524_v11 }
  0x3c   :  { %256 = vmatmul.bf16.gmra.mxu0 %v513_v12  ;;  %276 = vmatmul.bf16.gmra.mxu1 %v517_v13 }
  0x3d   :  { %296 = vmatmul.bf16.gmra.mxu2 %v521_v14  ;;  %316 = vmatmul.bf16.gmra.mxu3 %v525_v15 }
  0x4c   :  { %261 = vmatmul.bf16.gmra.mxu0 %v514_v16  ;;  %281 = vmatmul.bf16.gmra.mxu1 %v518_v17 }
  0x4d   :  { %301 = vmatmul.bf16.gmra.mxu2 %v522_v18  ;;  %321 = vmatmul.bf16.gmra.mxu3 %v526_v19 }
  0x5c   :  { %266 = vmatmul.bf16.gmra.mxu0 %v515_v20  ;;  %286 = vmatmul.bf16.gmra.mxu1 %v519_v21 }
  0x5d   :  { %306 = vmatmul.bf16.gmra.mxu2 %v523_v22  ;;  %326 = vmatmul.bf16.gmra.mxu3 %v527_v23 }
  0xa9   :  { %v252_v24 = vpop.f32.mrf.mxu0  ;;  %v272_v25 = vpop.f32.mrf.mxu1 }
  0xaa   :  { %v253_v31 = vadd.f32 %v779_v26, %v252_v24  ;;  %v273_v32 = vadd.f32 %v779_v26, %v272_v25 }
  0xb0   :  { %v292_v27 = vpop.f32.mrf.mxu2  ;;  %v312_v28 = vpop.f32.mrf.mxu3 }
  0xb1   :  { %v254_v29 = vpop.f32.mrf.mxu0  ;;  %v274_v30 = vpop.f32.mrf.mxu1  ;;  %v293_v39 = vadd.f32 %v779_v26, %v292_v27  ;;  %v313_v40 = vadd.f32 %v779_v26, %v312_v28 }
  0xb2   :  { %v255_v33 = vadd.f32 %v779_v26, %v254_v29  ;;  %v275_v34 = vadd.f32 %v779_v26, %v274_v30 }
  0xb4   :  { %v539_v35 = vpack.c.bf16 %v255_v33, %v253_v31  ;;  %v559_v36 = vpack.c.bf16 %v275_v34, %v273_v32 }
  0xb6   :  { %540 = vst [vmem:[#allocation7] sm:$0xff] %v539_v35  }
  0xb7   :  { %619 = vst [vmem:[#allocation7 + $0x20] sm:$0xff] %v559_v36  }
  0xb8   :  { %v294_v37 = vpop.f32.mrf.mxu2  ;;  %v314_v38 = vpop.f32.mrf.mxu3 }
  0xb9   :  { %v295_v41 = vadd.f32 %v779_v26, %v294_v37  ;;  %v315_v42 = vadd.f32 %v779_v26, %v314_v38  ;;  %v257_v43 = vpop.f32.mrf.mxu0  ;;  %v277_v44 = vpop.f32.mrf.mxu1 }
  0xba   :  { %v258_v51 = vadd.f32 %v779_v26, %v257_v43  ;;  %v278_v52 = vadd.f32 %v779_v26, %v277_v44 }
  0xbb   :  { %v579_v45 = vpack.c.bf16 %v295_v41, %v293_v39  ;;  %v599_v46 = vpack.c.bf16 %v315_v42, %v313_v40 }
  0xbd   :  { %623 = vst [vmem:[#allocation7 + $0x40] sm:$0xff] %v579_v45  }
  0xbe   :  { %627 = vst [vmem:[#allocation7 + $0x60] sm:$0xff] %v599_v46  }
  0xc0   :  { %v297_v47 = vpop.f32.mrf.mxu2  ;;  %v317_v48 = vpop.f32.mrf.mxu3 }
  0xc1   :  { %v259_v49 = vpop.f32.mrf.mxu0  ;;  %v279_v50 = vpop.f32.mrf.mxu1  ;;  %v298_v59 = vadd.f32 %v779_v26, %v297_v47  ;;  %v318_v60 = vadd.f32 %v779_v26, %v317_v48 }
  0xc2   :  { %v260_v53 = vadd.f32 %v779_v26, %v259_v49  ;;  %v280_v54 = vadd.f32 %v779_v26, %v279_v50 }
  0xc4   :  { %v544_v55 = vpack.c.bf16 %v260_v53, %v258_v51  ;;  %v564_v56 = vpack.c.bf16 %v280_v54, %v278_v52 }
  0xc6   :  { %616 = vst [vmem:[#allocation7 + $0x8] sm:$0xff] %v544_v55  }
  0xc7   :  { %620 = vst [vmem:[#allocation7 + $0x28] sm:$0xff] %v564_v56  }
  0xc8   :  { %v299_v57 = vpop.f32.mrf.mxu2  ;;  %v319_v58 = vpop.f32.mrf.mxu3 }
  0xc9   :  { %v300_v61 = vadd.f32 %v779_v26, %v299_v57  ;;  %v320_v62 = vadd.f32 %v779_v26, %v319_v58  ;;  %v262_v63 = vpop.f32.mrf.mxu0  ;;  %v282_v0 = vpop.f32.mrf.mxu1 }
  0xca   :  { %v263_v7 = vadd.f32 %v779_v26, %v262_v63  ;;  %v283_v8 = vadd.f32 %v779_v26, %v282_v0 }
  0xcb   :  { %v584_v1 = vpack.c.bf16 %v300_v61, %v298_v59  ;;  %v604_v2 = vpack.c.bf16 %v320_v62, %v318_v60 }
  0xcd   :  { %624 = vst [vmem:[#allocation7 + $0x48] sm:$0xff] %v584_v1  }
  0xce   :  { %628 = vst [vmem:[#allocation7 + $0x68] sm:$0xff] %v604_v2  }
  0xd0   :  { %v302_v3 = vpop.f32.mrf.mxu2  ;;  %v322_v4 = vpop.f32.mrf.mxu3 }
  0xd1   :  { %v264_v5 = vpop.f32.mrf.mxu0  ;;  %v284_v6 = vpop.f32.mrf.mxu1  ;;  %v303_v15 = vadd.f32 %v779_v26, %v302_v3  ;;  %v323_v16 = vadd.f32 %v779_v26, %v322_v4 }
  0xd2   :  { %v265_v9 = vadd.f32 %v779_v26, %v264_v5  ;;  %v285_v10 = vadd.f32 %v779_v26, %v284_v6 }
  0xd4   :  { %v549_v11 = vpack.c.bf16 %v265_v9, %v263_v7  ;;  %v569_v12 = vpack.c.bf16 %v285_v10, %v283_v8 }
  0xd6   :  { %617 = vst [vmem:[#allocation7 + $0x10] sm:$0xff] %v549_v11  }
  0xd7   :  { %621 = vst [vmem:[#allocation7 + $0x30] sm:$0xff] %v569_v12  }
  0xd8   :  { %v304_v13 = vpop.f32.mrf.mxu2  ;;  %v324_v14 = vpop.f32.mrf.mxu3 }
  0xd9   :  { %v305_v17 = vadd.f32 %v779_v26, %v304_v13  ;;  %v325_v18 = vadd.f32 %v779_v26, %v324_v14  ;;  %v267_v19 = vpop.f32.mrf.mxu0  ;;  %v287_v20 = vpop.f32.mrf.mxu1 }
  0xda   :  { %v268_v28 = vadd.f32 %v779_v26, %v267_v19  ;;  %v288_v29 = vadd.f32 %v779_v26, %v287_v20 }
  0xdb   :  { %v589_v21 = vpack.c.bf16 %v305_v17, %v303_v15  ;;  %v609_v22 = vpack.c.bf16 %v325_v18, %v323_v16 }
  0xdd   :  { %625 = vst [vmem:[#allocation7 + $0x50] sm:$0xff] %v589_v21  }
  0xde   :  { %629 = vst [vmem:[#allocation7 + $0x70] sm:$0xff] %v609_v22  }
  0xe0   :  { %v307_v23 = vpop.f32.mrf.mxu2  ;;  %v327_v24 = vpop.f32.mrf.mxu3 }
  0xe1   :  { %v269_v25 = vpop.f32.mrf.mxu0  ;;  %v289_v27 = vpop.f32.mrf.mxu1  ;;  %v308_v36 = vadd.f32 %v779_v26, %v307_v23  ;;  %v328_v37 = vadd.f32 %v779_v26, %v327_v24 }
  0xe2   :  { %v270_v30 = vadd.f32 %v779_v26, %v269_v25  ;;  %v290_v31 = vadd.f32 %v779_v26, %v289_v27 }
  0xe4   :  { %v554_v32 = vpack.c.bf16 %v270_v30, %v268_v28  ;;  %v574_v33 = vpack.c.bf16 %v290_v31, %v288_v29 }
  0xe6   :  { %618 = vst [vmem:[#allocation7 + $0x18] sm:$0xff] %v554_v32  }
  0xe7   :  { %622 = vst [vmem:[#allocation7 + $0x38] sm:$0xff] %v574_v33  }
  0xe8   :  { %v309_v34 = vpop.f32.mrf.mxu2  ;;  %v329_v35 = vpop.f32.mrf.mxu3 }
  0xe9   :  { %v310_v38 = vadd.f32 %v779_v26, %v309_v34  ;;  %v330_v39 = vadd.f32 %v779_v26, %v329_v35 }
  0xeb   :  { %v594_v40 = vpack.c.bf16 %v310_v38, %v308_v36  ;;  %v614_v41 = vpack.c.bf16 %v330_v39, %v328_v37 }
  0xed   :  { %626 = vst [vmem:[#allocation7 + $0x58] sm:$0xff] %v594_v40  }
  0xee   :  { %630 = vst [vmem:[#allocation7 + $0x78] sm:$0xff] %v614_v41  }
  0xef   :  { %408 = dma.vmem_to_hbm [thread:$0]  %s401_s24, 2048, %s403_s27, [#allocation4], %s740_s20, %s740_s20, %s741_s21  }
  0xf0   :  { %737 = dma.done.wait [#allocation4], 2048  }
  0xf1   :  { %738 = vsyncadd [#allocation4], 4294965248 }
  0xf2   :  { %413 = vsyncpa [#allocation3], 1 }
  0xf3   :  { %414 = vsyncpa [#allocation6], 1 }
  0xf4   :  { %415 = vsyncpa [#allocation4], 1 }

</bundles_post_ra>
